<compile_context>
chip_gen: v7x
topology: tpu7x:2x2x1
jax: 0.10.0
libtpu: 0.0.40
codegen_flags: <defaults>
</compile_context>

<pallas_src>
import functools

import jax
import jax.numpy as jnp
from jax import lax
from jax.experimental import pallas as pl
from jax.experimental.pallas import tpu as pltpu


# MXU input dtype. float32 is exact on all generations; jnp.bfloat16 halves the
# remaining MXU-operand bytes on v6e/v7x (f32 accumulation kept everywhere).
MM_DTYPE = jnp.float32


def _round_up(v, m):
    return (v + m - 1) // m * m


def _leaky_relu(x, slope=0.2):
    return jnp.where(x >= 0, x, slope * x)


def _mm(a, b):
    """Plain matmul on the MXU with f32 accumulation."""
    return lax.dot_general(a.astype(MM_DTYPE), b.astype(MM_DTYPE),
                           dimension_numbers=(((1,), (0,)), ((), ())),
                           preferred_element_type=jnp.float32)


def _mm_t(a, b):
    """a^T @ b without materializing a^T: contract the leading (edge) axis of
    both operands.  This is how the dst scatter-add runs without a DT input."""
    return lax.dot_general(a.astype(MM_DTYPE), b.astype(MM_DTYPE),
                           dimension_numbers=(((0,), (0,)), ((), ())),
                           preferred_element_type=jnp.float32)


def _gat_aggregate(h, a_src_n, a_dst_n, a_edge_e, bias, S, D):
    """PyG-style GATConv aggregation (heads=1; self-loops already in S/D/ea).

    h        : (Np, C)  projected node features (f32)
    a_src_n  : (Np, 1)  per-node source attention term  x @ (W @ att_src)
    a_dst_n  : (Np, 1)  per-node dest   attention term  x @ (W @ att_dst)
    a_edge_e : (Et, 1)  per-edge edge-feature attention term
    S, D     : (Et, Np) one-hot src / dst incidence
    """
    # gather the per-node attention terms onto edges — one-hot matvecs (MXU)
    alpha = _leaky_relu(_mm(S, a_src_n) + _mm(D, a_dst_n) + a_edge_e)   # (Et,1)

    # segment softmax over destination nodes.  The masked max is the one true
    # cross-sublane reduction; all gathers/scatters below ride the idle MXU.
    # -1e30 is a finite "-inf" so 0 * max stays well-defined for padded rows /
    # columns; every real node has >= 1 incoming edge thanks to the self-loops
    # (if the self-loop fold is ever removed, revisit this).
    a_max_n = jnp.max(jnp.where(D > 0, alpha, -1e30), axis=0, keepdims=True)  # (1,Np)
    a_max_e = _mm(D, jnp.transpose(a_max_n))                                   # (Et,1)
    p = jnp.exp(alpha - a_max_e)                                               # (Et,1)
    denom_n = _mm_t(D, p)                                                      # (Np,1) = D^T p
    denom_e = _mm(D, denom_n)                                                  # (Et,1)
    # TODO(synk): p * pl.reciprocal(denom_e + 1e-16, approx=True) would move
    # the divide to the EUP slot if the z tolerance budget allows.
    a_norm = p / (denom_e + 1e-16)

    # message passing: out[n] = sum_e D[e,n] * h[src[e]] * a_norm[e]
    h_src = _mm(S, h)                      # (Et, C)
    out = _mm_t(D, h_src * a_norm)         # (Np, C)  scatter-add, no DT needed
    return out + bias


def _net_fused_kernel(x_ref, ea_ref, s_ref, d_ref,
                      wcat1_ref, b1_ref, w2_ref, watt2_ref, b2_ref, wecat_ref,
                      z_ref, dec_ref):
    x = x_ref[...]                               # (Np, Fin)  f32
    S = s_ref[...].astype(MM_DTYPE)              # (Et, Np)   bf16 in HBM, exact
    D = d_ref[...].astype(MM_DTYPE)

    # edge-feature attention terms for BOTH convs in one MXU pass
    a_edge = _mm(ea_ref[...], wecat_ref[...])    # (Et, 2)

    # ---------------- conv1: fused projection x @ [W1 | ws1 | wd1] ----------
    c1 = b1_ref.shape[1]
    hcat1 = _mm(x, wcat1_ref[...])               # (Np, C1 + 2)
    out1 = _gat_aggregate(hcat1[:, :c1],
                          hcat1[:, c1:c1 + 1], hcat1[:, c1 + 1:c1 + 2],
                          a_edge[:, 0:1], b1_ref[...], S, D)
    h1 = jnp.maximum(out1, 0.0)                  # relu

    # ---------------- conv2: W2 pre-padded to 128 lanes ---------------------
    h2 = _mm(h1, w2_ref[...])                    # (Np, C2p)  padded cols stay 0
    att2 = _mm(h1, watt2_ref[...])               # (Np, 2)
    z = _gat_aggregate(h2, att2[:, 0:1], att2[:, 1:2],
                       a_edge[:, 1:2], b2_ref[...], S, D)
    z_ref[...] = z.astype(z_ref.dtype)           # lane-dense (Np, C2p) store

    # ---------------- decode on the ORIGINAL x, reusing S/D ------------------
    # res[e] = x[src[e]] . x[dst[e]]; hadamard + ones-matvec keeps the feature
    # reduction on the MXU.  Only the first E rows (real edges) are used.
    xs = _mm(S, x)                               # (Et, Fin)
    xd = _mm(D, x)                               # (Et, Fin)
    res = _mm(xs * xd, jnp.ones((x.shape[1], 1), MM_DTYPE))   # (Et, 1)
    eh = dec_ref.shape[0]
    dec_ref[...] = res[:eh] + res[eh:2 * eh]     # torch half-fold


# ----------------------------------------------------------------------------
# Parameters
# ----------------------------------------------------------------------------
def init_gatconv(key, in_ch, out_ch, edge_dim):
    k = jax.random.split(key, 5)

    def glorot(kk, shape):
        lim = jnp.sqrt(6.0 / (shape[0] + shape[-1]))
        return jax.random.uniform(kk, shape, jnp.float32, -lim, lim)

    W = glorot(k[0], (in_ch, out_ch))
    W_edge = glorot(k[1], (edge_dim, out_ch))
    att_src = glorot(k[2], (1, out_ch))[0]
    att_dst = glorot(k[3], (1, out_ch))[0]
    att_edge = glorot(k[4], (1, out_ch))[0]
    return {
        # raw parameters (used by the pure-JAX reference)
        "W": W, "W_edge": W_edge,
        "att_src": att_src, "att_dst": att_dst, "att_edge": att_edge,
        "bias": jnp.zeros((out_ch,), jnp.float32),
        # folded forms consumed by the fused Pallas kernel (exact in f32)
        "w_src": (W @ att_src)[:, None],           # (in_ch, 1)
        "w_dst": (W @ att_dst)[:, None],           # (in_ch, 1)
        "we_att": (W_edge @ att_edge)[:, None],    # (edge_dim, 1)
    }


def init_net(key, in_channels, hidden_channels, out_channels, edge_dim=60):
    k1, k2 = jax.random.split(key)
    return {"conv1": init_gatconv(k1, in_channels, hidden_channels, edge_dim),
            "conv2": init_gatconv(k2, hidden_channels, out_channels, edge_dim)}


# ----------------------------------------------------------------------------
# Forward
# ----------------------------------------------------------------------------
def _whole_block_spec(shape):
    return pl.BlockSpec(shape, lambda i: (0,) * len(shape))


@functools.partial(jax.jit, static_argnames=("batch_size",))
def net_forward(params, x, edge_index, edge_features, batch_size):
    """Matches torch Net.forward: returns (logits, z).  z is returned for
    fidelity with the reference module even though its forward discards it."""
    N, Fin = x.shape
    E = edge_index.shape[1]
    if E % 2 != 0:
        raise ValueError("E must be even: torch does res[:E//2] += res[E//2:]")
    Eh = E // 2
    Ed = edge_features.shape[1]

    # sublane-aligned sizes (padded rows/columns are all-zero and inert)
    Np = _round_up(N, 8)
    Et = E + N                      # real edges + one self-loop per real node
    Etp = _round_up(Et, 8)

    src, dst = edge_index[0], edge_index[1]

    # --- trace-time graph glue (fused into this jit around the custom call) --
    loop = jnp.arange(N, dtype=edge_index.dtype)
    src_all = jnp.concatenate([src, loop])
    dst_all = jnp.concatenate([dst, loop])

    node_ids = jnp.arange(Np, dtype=edge_index.dtype)
    # bf16 one-hots: 0/1 exact, half the DMA bytes of the dominant operands.
    S = (src_all[:, None] == node_ids[None, :]).astype(jnp.bfloat16)  # (Et,Np)
    D = (dst_all[:, None] == node_ids[None, :]).astype(jnp.bfloat16)  # (Et,Np)

    mean_attr = jnp.mean(edge_features, axis=0, keepdims=True)
    ea = jnp.concatenate(
        [edge_features, jnp.broadcast_to(mean_attr, (N, Ed))], axis=0)
    # TODO(synk): the N duplicated mean-attr rows could be replaced by a single
    # row + in-kernel broadcast to shave N*Ed DMA bytes at larger N.

    S = jnp.pad(S, ((0, Etp - Et), (0, 0)))
    D = jnp.pad(D, ((0, Etp - Et), (0, 0)))
    ea = jnp.pad(ea, ((0, Etp - Et), (0, 0)))
    x_pad = jnp.pad(x, ((0, Np - N), (0, 0)))

    c1, c2 = params["conv1"], params["conv2"]
    C1 = c1["W"].shape[1]
    C2 = c2["W"].shape[1]
    C2p = _round_up(C2, 128)        # lane-dense z store, sliced back outside

    wcat1 = jnp.concatenate([c1["W"], c1["w_src"], c1["w_dst"]], axis=1)  # (Fin,C1+2)
    b1 = c1["bias"].reshape(1, C1)
    w2p = jnp.pad(c2["W"], ((0, 0), (0, C2p - C2)))                       # (C1,C2p)
    watt2 = jnp.concatenate([c2["w_src"], c2["w_dst"]], axis=1)           # (C1,2)
    b2p = jnp.pad(c2["bias"].reshape(1, C2), ((0, 0), (0, C2p - C2)))     # (1,C2p)
    wecat = jnp.concatenate([c1["we_att"], c2["we_att"]], axis=1)         # (Ed,2)

    args = (x_pad, ea, S, D, wcat1, b1, w2p, watt2, b2p, wecat)

    # explicit VMEM budget (review): inputs + outputs (double-buffered by the
    # default pipeliner) plus the in-kernel f32 copies of S/D, the (Et,Np)
    # softmax-mask temp and the gathered per-edge intermediates.
    def _nbytes(a):
        return int(a.size) * a.dtype.itemsize
    io_bytes = sum(_nbytes(a) for a in args) + Np * C2p * 4 + Eh * 4
    work_bytes = 4 * Etp * Np * 4 + 2 * Etp * max(Fin, C2p) * 4 + 4 * Np * C2p
    vmem_limit = int(min(max(2 * io_bytes + work_bytes + (4 << 20), 16 << 20),
                         64 << 20))

    z_pad, dec = pl.pallas_call(
        _net_fused_kernel,
        grid=(1,),                                  # everything fits one block
        in_specs=[_whole_block_spec(a.shape) for a in args],
        out_specs=(_whole_block_spec((Np, C2p)),
                   _whole_block_spec((Eh, 1))),
        out_shape=(jax.ShapeDtypeStruct((Np, C2p), jnp.float32),
                   jax.ShapeDtypeStruct((Eh, 1), jnp.float32)),
        # NOTE: grid=(1,) => pipelining buys nothing; for large graphs also set
        # pipeline_mode=pl.Buffered(1) on the big operands to drop the unused
        # double buffer.
        # TODO(synk): when (Et, Np) no longer fits one VMEM block (hit first on
        # v7x's 64 MiB), tile the edge axis on a ("parallel", ...) grid with the
        # (Np, C) output as an "arbitrary"-axis accumulator, or switch to
        # scalar-prefetched index gathers instead of dense one-hots.
        compiler_params=pltpu.CompilerParams(
            dimension_semantics=("arbitrary",),
            vmem_limit_bytes=vmem_limit),
    )(*args)

    logits = dec[:, 0].reshape(batch_size, -1)
    z = z_pad[:N, :C2]
    return logits, z


# ----------------------------------------------------------------------------
# Pure-JAX reference (raw / unfolded parameters) for correctness checking
# ----------------------------------------------------------------------------
def _gat_conv_ref(p, x, edge_index, edge_attr):
    N = x.shape[0]
    src, dst = edge_index[0], edge_index[1]
    loop = jnp.arange(N, dtype=src.dtype)
    src = jnp.concatenate([src, loop])
    dst = jnp.concatenate([dst, loop])
    mean_attr = jnp.mean(edge_attr, axis=0, keepdims=True)
    ea = jnp.concatenate(
        [edge_attr, jnp.broadcast_to(mean_attr, (N, edge_attr.shape[1]))], axis=0)
    h = x @ p["W"]
    e = ea @ p["W_edge"]
    alpha = (jnp.sum(h * p["att_src"], -1)[src]
             + jnp.sum(h * p["att_dst"], -1)[dst]
             + jnp.sum(e * p["att_edge"], -1))
    alpha = jax.nn.leaky_relu(alpha, 0.2)
    a_max = jax.ops.segment_max(alpha, dst, num_segments=N)
    a_exp = jnp.exp(alpha - a_max[dst])
    denom = jax.ops.segment_sum(a_exp, dst, num_segments=N)
    a_norm = a_exp / (denom[dst] + 1e-16)
    out = jax.ops.segment_sum(h[src] * a_norm[:, None], dst, num_segments=N)
    return out + p["bias"]


def _net_forward_ref(params, x, edge_index, edge_features, batch_size):
    h = jax.nn.relu(_gat_conv_ref(params["conv1"], x, edge_index, edge_features))
    z = _gat_conv_ref(params["conv2"], h, edge_index, edge_features)
    res = jnp.sum(x[edge_index[0]] * x[edge_index[1]], axis=-1)
    E = res.shape[0]
    logits = (res[:E // 2] + res[E // 2:]).reshape(batch_size, -1)
    return logits, z


# ----------------------------------------------------------------------------
if __name__ == "__main__":
    in_channels, hidden_channels, out_channels, edge_dim = 32, 16, 16, 60
    N, E, batch_size = 8, 8, 2

    key = jax.random.PRNGKey(0)
    kx, ke, ki, kp = jax.random.split(key, 4)
    x = jax.random.normal(kx, (N, in_channels), jnp.float32)
    edge_features = jax.random.normal(ke, (E, edge_dim), jnp.float32)
    edge_index = jax.random.randint(ki, (2, E), 0, N, dtype=jnp.int32)

    params = init_net(kp, in_channels, hidden_channels, out_channels, edge_dim)

    logits, z = net_forward(params, x, edge_index, edge_features, batch_size)
    logits = jax.block_until_ready(logits)
    z = jax.block_until_ready(z)

    # correctness check vs. pure-JAX reference (real asserts, no tautology)
    logits_ref, z_ref = _net_forward_ref(params, x, edge_index, edge_features,
                                         batch_size)
    tol = 1e-4 if MM_DTYPE == jnp.float32 else 3e-2
    assert logits.shape == (batch_size, (E // 2) // batch_size), logits.shape
    assert jnp.allclose(logits, logits_ref, rtol=tol, atol=tol), (logits, logits_ref)
    # z uses the attention weights folded into the projections -> tiny
    # reassociation differences; 10x looser tolerance.
    assert jnp.allclose(z, z_ref, rtol=10 * tol, atol=10 * tol), (z, z_ref)

    print("KERNEL_OK")
</pallas_src>

<mosaic_0001>
module attributes {stable_mosaic.version = 11 : i64} {
  func.func @_net_fused_kernel(%arg0: i32, %arg1: memref<8x32xf32, #tpu.memory_space<vmem>>, %arg2: memref<16x60xf32, #tpu.memory_space<vmem>>, %arg3: memref<16x8xbf16, #tpu.memory_space<vmem>>, %arg4: memref<16x8xbf16, #tpu.memory_space<vmem>>, %arg5: memref<32x18xf32, #tpu.memory_space<vmem>>, %arg6: memref<1x16xf32, #tpu.memory_space<vmem>>, %arg7: memref<16x128xf32, #tpu.memory_space<vmem>>, %arg8: memref<16x2xf32, #tpu.memory_space<vmem>>, %arg9: memref<1x128xf32, #tpu.memory_space<vmem>>, %arg10: memref<60x2xf32, #tpu.memory_space<vmem>>, %arg11: memref<8x128xf32, #tpu.memory_space<vmem>>, %arg12: memref<4x1xf32, #tpu.memory_space<vmem>>) attributes {dimension_semantics = [#tpu.dimension_semantics<arbitrary>], iteration_bounds = array<i64: 1>, scalar_prefetch = 0 : i64, scratch_operands = 0 : i64, tpu.core_type = #tpu.core_type<tc>, window_params = [{pipeline_mode = #tpu.pipeline_mode<synchronous>, transform_indices = @transform_0, window_bounds = array<i64: 8, 32>}, {pipeline_mode = #tpu.pipeline_mode<synchronous>, transform_indices = @transform_1, window_bounds = array<i64: 16, 60>}, {pipeline_mode = #tpu.pipeline_mode<synchronous>, transform_indices = @transform_2, window_bounds = array<i64: 16, 8>}, {pipeline_mode = #tpu.pipeline_mode<synchronous>, transform_indices = @transform_3, window_bounds = array<i64: 16, 8>}, {pipeline_mode = #tpu.pipeline_mode<synchronous>, transform_indices = @transform_4, window_bounds = array<i64: 32, 18>}, {pipeline_mode = #tpu.pipeline_mode<synchronous>, transform_indices = @transform_5, window_bounds = array<i64: 1, 16>}, {pipeline_mode = #tpu.pipeline_mode<synchronous>, transform_indices = @transform_6, window_bounds = array<i64: 16, 128>}, {pipeline_mode = #tpu.pipeline_mode<synchronous>, transform_indices = @transform_7, window_bounds = array<i64: 16, 2>}, {pipeline_mode = #tpu.pipeline_mode<synchronous>, transform_indices = @transform_8, window_bounds = array<i64: 1, 128>}, {pipeline_mode = #tpu.pipeline_mode<synchronous>, transform_indices = @transform_9, window_bounds = array<i64: 60, 2>}, {pipeline_mode = #tpu.pipeline_mode<synchronous>, transform_indices = @transform_10, window_bounds = array<i64: 8, 128>}, {pipeline_mode = #tpu.pipeline_mode<synchronous>, transform_indices = @transform_11, window_bounds = array<i64: 4, 1>}]} {
    %c0 = arith.constant 0 : index
    %c0_0 = arith.constant 0 : index
    %0 = vector.load %arg1[%c0, %c0_0] : memref<8x32xf32, #tpu.memory_space<vmem>>, vector<8x32xf32>
    %c0_1 = arith.constant 0 : index
    %c0_2 = arith.constant 0 : index
    %1 = vector.load %arg3[%c0_1, %c0_2] : memref<16x8xbf16, #tpu.memory_space<vmem>>, vector<16x8xbf16>
    %2 = arith.extf %1 : vector<16x8xbf16> to vector<16x8xf32>
    %c0_3 = arith.constant 0 : index
    %c0_4 = arith.constant 0 : index
    %3 = vector.load %arg4[%c0_3, %c0_4] : memref<16x8xbf16, #tpu.memory_space<vmem>>, vector<16x8xbf16>
    %4 = arith.extf %3 : vector<16x8xbf16> to vector<16x8xf32>
    %c0_5 = arith.constant 0 : index
    %c0_6 = arith.constant 0 : index
    %5 = vector.load %arg2[%c0_5, %c0_6] : memref<16x60xf32, #tpu.memory_space<vmem>>, vector<16x60xf32>
    %c0_7 = arith.constant 0 : index
    %c0_8 = arith.constant 0 : index
    %6 = vector.load %arg10[%c0_7, %c0_8] : memref<60x2xf32, #tpu.memory_space<vmem>>, vector<60x2xf32>
    %cst = arith.constant dense<0.000000e+00> : vector<16x2xf32>
    %7 = tpu.matmul %5, %6, %cst {dimension_numbers = #tpu.dot_dimension_numbers<[1], [0], [0], [1], [0, 0, 1, 1], [], []>} : vector<16x60xf32>, vector<60x2xf32>, vector<16x2xf32> -> vector<16x2xf32>
    %c0_9 = arith.constant 0 : index
    %c0_10 = arith.constant 0 : index
    %8 = vector.load %arg5[%c0_9, %c0_10] : memref<32x18xf32, #tpu.memory_space<vmem>>, vector<32x18xf32>
    %cst_11 = arith.constant dense<0.000000e+00> : vector<8x18xf32>
    %9 = tpu.matmul %0, %8, %cst_11 {dimension_numbers = #tpu.dot_dimension_numbers<[1], [0], [0], [1], [0, 0, 1, 1], [], []>} : vector<8x32xf32>, vector<32x18xf32>, vector<8x18xf32> -> vector<8x18xf32>
    %10 = vector.extract_strided_slice %9 {offsets = [0, 0], sizes = [8, 16], strides = [1, 1]} : vector<8x18xf32> to vector<8x16xf32>
    %11 = vector.extract_strided_slice %9 {offsets = [0, 16], sizes = [8, 1], strides = [1, 1]} : vector<8x18xf32> to vector<8x1xf32>
    %12 = vector.extract_strided_slice %9 {offsets = [0, 17], sizes = [8, 1], strides = [1, 1]} : vector<8x18xf32> to vector<8x1xf32>
    %13 = vector.extract_strided_slice %7 {offsets = [0, 0], sizes = [16, 1], strides = [1, 1]} : vector<16x2xf32> to vector<16x1xf32>
    %c0_12 = arith.constant 0 : index
    %c0_13 = arith.constant 0 : index
    %14 = vector.load %arg6[%c0_12, %c0_13] : memref<1x16xf32, #tpu.memory_space<vmem>>, vector<1x16xf32>
    %cst_14 = arith.constant dense<0.000000e+00> : vector<16x1xf32>
    %15 = tpu.matmul %2, %11, %cst_14 {dimension_numbers = #tpu.dot_dimension_numbers<[1], [0], [0], [1], [0, 0, 1, 1], [], []>} : vector<16x8xf32>, vector<8x1xf32>, vector<16x1xf32> -> vector<16x1xf32>
    %cst_15 = arith.constant dense<0.000000e+00> : vector<16x1xf32>
    %16 = tpu.matmul %4, %12, %cst_15 {dimension_numbers = #tpu.dot_dimension_numbers<[1], [0], [0], [1], [0, 0, 1, 1], [], []>} : vector<16x8xf32>, vector<8x1xf32>, vector<16x1xf32> -> vector<16x1xf32>
    %17 = arith.addf %15, %16 : vector<16x1xf32>
    %18 = arith.addf %17, %13 : vector<16x1xf32>
    %cst_16 = arith.constant 0.000000e+00 : f32
    %19 = vector.broadcast %cst_16 : f32 to vector<16x1xf32>
    %20 = arith.cmpf oge, %18, %19 : vector<16x1xf32>
    %cst_17 = arith.constant 2.000000e-01 : f32
    %21 = vector.broadcast %cst_17 : f32 to vector<16x1xf32>
    %22 = arith.mulf %21, %18 : vector<16x1xf32>
    %23 = arith.select %20, %18, %22 : vector<16x1xi1>, vector<16x1xf32>
    %cst_18 = arith.constant 0.000000e+00 : f32
    %24 = vector.broadcast %cst_18 : f32 to vector<16x8xf32>
    %25 = arith.cmpf ogt, %4, %24 : vector<16x8xf32>
    %cst_19 = arith.constant -1.000000e+30 : f32
    %26 = vector.shape_cast %23 : vector<16x1xf32> to vector<16x1xf32>
    %27 = vector.broadcast %26 : vector<16x1xf32> to vector<16x8xf32>
    %28 = vector.broadcast %cst_19 : f32 to vector<16x8xf32>
    %29 = arith.select %25, %27, %28 : vector<16x8xi1>, vector<16x8xf32>
    %cst_20 = arith.constant dense<0xFF800000> : vector<8xf32>
    %30 = vector.multi_reduction <maximumf>, %29, %cst_20 [0] : vector<16x8xf32> to vector<8xf32>
    %31 = vector.shape_cast %30 : vector<8xf32> to vector<1x8xf32>
    %32 = tpu.transpose %31, [1, 0] : vector<1x8xf32> -> vector<8x1xf32>
    %cst_21 = arith.constant dense<0.000000e+00> : vector<16x1xf32>
    %33 = tpu.matmul %4, %32, %cst_21 {dimension_numbers = #tpu.dot_dimension_numbers<[1], [0], [0], [1], [0, 0, 1, 1], [], []>} : vector<16x8xf32>, vector<8x1xf32>, vector<16x1xf32> -> vector<16x1xf32>
    %34 = arith.subf %23, %33 : vector<16x1xf32>
    %35 = math.exp %34 : vector<16x1xf32>
    %cst_22 = arith.constant dense<0.000000e+00> : vector<8x1xf32>
    %36 = tpu.matmul %4, %35, %cst_22 {dimension_numbers = #tpu.dot_dimension_numbers<[0], [0], [1], [1], [0, 1, 1, 1], [], []>} : vector<16x8xf32>, vector<16x1xf32>, vector<8x1xf32> -> vector<8x1xf32>
    %cst_23 = arith.constant dense<0.000000e+00> : vector<16x1xf32>
    %37 = tpu.matmul %4, %36, %cst_23 {dimension_numbers = #tpu.dot_dimension_numbers<[1], [0], [0], [1], [0, 0, 1, 1], [], []>} : vector<16x8xf32>, vector<8x1xf32>, vector<16x1xf32> -> vector<16x1xf32>
    %cst_24 = arith.constant 1.000000e-16 : f32
    %38 = vector.broadcast %cst_24 : f32 to vector<16x1xf32>
    %39 = arith.addf %37, %38 : vector<16x1xf32>
    %40 = arith.divf %35, %39 : vector<16x1xf32>
    %cst_25 = arith.constant dense<0.000000e+00> : vector<16x16xf32>
    %41 = tpu.matmul %2, %10, %cst_25 {dimension_numbers = #tpu.dot_dimension_numbers<[1], [0], [0], [1], [0, 0, 1, 1], [], []>} : vector<16x8xf32>, vector<8x16xf32>, vector<16x16xf32> -> vector<16x16xf32>
    %42 = vector.broadcast %40 : vector<16x1xf32> to vector<16x16xf32>
    %43 = arith.mulf %41, %42 : vector<16x16xf32>
    %cst_26 = arith.constant dense<0.000000e+00> : vector<8x16xf32>
    %44 = tpu.matmul %4, %43, %cst_26 {dimension_numbers = #tpu.dot_dimension_numbers<[0], [0], [1], [1], [0, 1, 1, 1], [], []>} : vector<16x8xf32>, vector<16x16xf32>, vector<8x16xf32> -> vector<8x16xf32>
    %45 = vector.broadcast %14 : vector<1x16xf32> to vector<8x16xf32>
    %46 = arith.addf %44, %45 : vector<8x16xf32>
    %cst_27 = arith.constant 0.000000e+00 : f32
    %47 = vector.broadcast %cst_27 : f32 to vector<8x16xf32>
    %48 = arith.maximumf %46, %47 : vector<8x16xf32>
    %c0_28 = arith.constant 0 : index
    %c0_29 = arith.constant 0 : index
    %49 = vector.load %arg7[%c0_28, %c0_29] : memref<16x128xf32, #tpu.memory_space<vmem>>, vector<16x128xf32>
    %cst_30 = arith.constant dense<0.000000e+00> : vector<8x128xf32>
    %50 = tpu.matmul %48, %49, %cst_30 {dimension_numbers = #tpu.dot_dimension_numbers<[1], [0], [0], [1], [0, 0, 1, 1], [], []>} : vector<8x16xf32>, vector<16x128xf32>, vector<8x128xf32> -> vector<8x128xf32>
    %c0_31 = arith.constant 0 : index
    %c0_32 = arith.constant 0 : index
    %51 = vector.load %arg8[%c0_31, %c0_32] : memref<16x2xf32, #tpu.memory_space<vmem>>, vector<16x2xf32>
    %cst_33 = arith.constant dense<0.000000e+00> : vector<8x2xf32>
    %52 = tpu.matmul %48, %51, %cst_33 {dimension_numbers = #tpu.dot_dimension_numbers<[1], [0], [0], [1], [0, 0, 1, 1], [], []>} : vector<8x16xf32>, vector<16x2xf32>, vector<8x2xf32> -> vector<8x2xf32>
    %53 = vector.extract_strided_slice %52 {offsets = [0, 0], sizes = [8, 1], strides = [1, 1]} : vector<8x2xf32> to vector<8x1xf32>
    %54 = vector.extract_strided_slice %52 {offsets = [0, 1], sizes = [8, 1], strides = [1, 1]} : vector<8x2xf32> to vector<8x1xf32>
    %55 = vector.extract_strided_slice %7 {offsets = [0, 1], sizes = [16, 1], strides = [1, 1]} : vector<16x2xf32> to vector<16x1xf32>
    %c0_34 = arith.constant 0 : index
    %c0_35 = arith.constant 0 : index
    %56 = vector.load %arg9[%c0_34, %c0_35] : memref<1x128xf32, #tpu.memory_space<vmem>>, vector<1x128xf32>
    %cst_36 = arith.constant dense<0.000000e+00> : vector<16x1xf32>
    %57 = tpu.matmul %2, %53, %cst_36 {dimension_numbers = #tpu.dot_dimension_numbers<[1], [0], [0], [1], [0, 0, 1, 1], [], []>} : vector<16x8xf32>, vector<8x1xf32>, vector<16x1xf32> -> vector<16x1xf32>
    %cst_37 = arith.constant dense<0.000000e+00> : vector<16x1xf32>
    %58 = tpu.matmul %4, %54, %cst_37 {dimension_numbers = #tpu.dot_dimension_numbers<[1], [0], [0], [1], [0, 0, 1, 1], [], []>} : vector<16x8xf32>, vector<8x1xf32>, vector<16x1xf32> -> vector<16x1xf32>
    %59 = arith.addf %57, %58 : vector<16x1xf32>
    %60 = arith.addf %59, %55 : vector<16x1xf32>
    %cst_38 = arith.constant 0.000000e+00 : f32
    %61 = vector.broadcast %cst_38 : f32 to vector<16x1xf32>
    %62 = arith.cmpf oge, %60, %61 : vector<16x1xf32>
    %cst_39 = arith.constant 2.000000e-01 : f32
    %63 = vector.broadcast %cst_39 : f32 to vector<16x1xf32>
    %64 = arith.mulf %63, %60 : vector<16x1xf32>
    %65 = arith.select %62, %60, %64 : vector<16x1xi1>, vector<16x1xf32>
    %cst_40 = arith.constant 0.000000e+00 : f32
    %66 = vector.broadcast %cst_40 : f32 to vector<16x8xf32>
    %67 = arith.cmpf ogt, %4, %66 : vector<16x8xf32>
    %cst_41 = arith.constant -1.000000e+30 : f32
    %68 = vector.shape_cast %65 : vector<16x1xf32> to vector<16x1xf32>
    %69 = vector.broadcast %68 : vector<16x1xf32> to vector<16x8xf32>
    %70 = vector.broadcast %cst_41 : f32 to vector<16x8xf32>
    %71 = arith.select %67, %69, %70 : vector<16x8xi1>, vector<16x8xf32>
    %cst_42 = arith.constant dense<0xFF800000> : vector<8xf32>
    %72 = vector.multi_reduction <maximumf>, %71, %cst_42 [0] : vector<16x8xf32> to vector<8xf32>
    %73 = vector.shape_cast %72 : vector<8xf32> to vector<1x8xf32>
    %74 = tpu.transpose %73, [1, 0] : vector<1x8xf32> -> vector<8x1xf32>
    %cst_43 = arith.constant dense<0.000000e+00> : vector<16x1xf32>
    %75 = tpu.matmul %4, %74, %cst_43 {dimension_numbers = #tpu.dot_dimension_numbers<[1], [0], [0], [1], [0, 0, 1, 1], [], []>} : vector<16x8xf32>, vector<8x1xf32>, vector<16x1xf32> -> vector<16x1xf32>
    %76 = arith.subf %65, %75 : vector<16x1xf32>
    %77 = math.exp %76 : vector<16x1xf32>
    %cst_44 = arith.constant dense<0.000000e+00> : vector<8x1xf32>
    %78 = tpu.matmul %4, %77, %cst_44 {dimension_numbers = #tpu.dot_dimension_numbers<[0], [0], [1], [1], [0, 1, 1, 1], [], []>} : vector<16x8xf32>, vector<16x1xf32>, vector<8x1xf32> -> vector<8x1xf32>
    %cst_45 = arith.constant dense<0.000000e+00> : vector<16x1xf32>
    %79 = tpu.matmul %4, %78, %cst_45 {dimension_numbers = #tpu.dot_dimension_numbers<[1], [0], [0], [1], [0, 0, 1, 1], [], []>} : vector<16x8xf32>, vector<8x1xf32>, vector<16x1xf32> -> vector<16x1xf32>
    %cst_46 = arith.constant 1.000000e-16 : f32
    %80 = vector.broadcast %cst_46 : f32 to vector<16x1xf32>
    %81 = arith.addf %79, %80 : vector<16x1xf32>
    %82 = arith.divf %77, %81 : vector<16x1xf32>
    %cst_47 = arith.constant dense<0.000000e+00> : vector<16x128xf32>
    %83 = tpu.matmul %2, %50, %cst_47 {dimension_numbers = #tpu.dot_dimension_numbers<[1], [0], [0], [1], [0, 0, 1, 1], [], []>} : vector<16x8xf32>, vector<8x128xf32>, vector<16x128xf32> -> vector<16x128xf32>
    %84 = vector.broadcast %82 : vector<16x1xf32> to vector<16x128xf32>
    %85 = arith.mulf %83, %84 : vector<16x128xf32>
    %cst_48 = arith.constant dense<0.000000e+00> : vector<8x128xf32>
    %86 = tpu.matmul %4, %85, %cst_48 {dimension_numbers = #tpu.dot_dimension_numbers<[0], [0], [1], [1], [0, 1, 1, 1], [], []>} : vector<16x8xf32>, vector<16x128xf32>, vector<8x128xf32> -> vector<8x128xf32>
    %87 = vector.broadcast %56 : vector<1x128xf32> to vector<8x128xf32>
    %88 = arith.addf %86, %87 : vector<8x128xf32>
    %c0_49 = arith.constant 0 : index
    %c0_50 = arith.constant 0 : index
    %89 = vector.load %arg11[%c0_49, %c0_50] : memref<8x128xf32, #tpu.memory_space<vmem>>, vector<8x128xf32>
    tpu.vector_store %arg11[%c0_49, %c0_50], %88 {strides = array<i32>} : memref<8x128xf32, #tpu.memory_space<vmem>>, vector<8x128xf32>,
    %cst_51 = arith.constant dense<0.000000e+00> : vector<16x32xf32>
    %90 = tpu.matmul %2, %0, %cst_51 {dimension_numbers = #tpu.dot_dimension_numbers<[1], [0], [0], [1], [0, 0, 1, 1], [], []>} : vector<16x8xf32>, vector<8x32xf32>, vector<16x32xf32> -> vector<16x32xf32>
    %cst_52 = arith.constant dense<0.000000e+00> : vector<16x32xf32>
    %91 = tpu.matmul %4, %0, %cst_52 {dimension_numbers = #tpu.dot_dimension_numbers<[1], [0], [0], [1], [0, 0, 1, 1], [], []>} : vector<16x8xf32>, vector<8x32xf32>, vector<16x32xf32> -> vector<16x32xf32>
    %92 = arith.mulf %90, %91 : vector<16x32xf32>
    %cst_53 = arith.constant 1.000000e+00 : f32
    %93 = vector.broadcast %cst_53 : f32 to vector<32x1xf32>
    %cst_54 = arith.constant dense<0.000000e+00> : vector<16x1xf32>
    %94 = tpu.matmul %92, %93, %cst_54 {dimension_numbers = #tpu.dot_dimension_numbers<[1], [0], [0], [1], [0, 0, 1, 1], [], []>} : vector<16x32xf32>, vector<32x1xf32>, vector<16x1xf32> -> vector<16x1xf32>
    %95 = vector.extract_strided_slice %94 {offsets = [0, 0], sizes = [4, 1], strides = [1, 1]} : vector<16x1xf32> to vector<4x1xf32>
    %96 = vector.extract_strided_slice %94 {offsets = [4, 0], sizes = [4, 1], strides = [1, 1]} : vector<16x1xf32> to vector<4x1xf32>
    %97 = arith.addf %95, %96 : vector<4x1xf32>
    %c0_55 = arith.constant 0 : index
    %c0_56 = arith.constant 0 : index
    %98 = vector.load %arg12[%c0_55, %c0_56] : memref<4x1xf32, #tpu.memory_space<vmem>>, vector<4x1xf32>
    tpu.vector_store %arg12[%c0_55, %c0_56], %97 {strides = array<i32>} : memref<4x1xf32, #tpu.memory_space<vmem>>, vector<4x1xf32>,
    return
  }
  func.func @transform_0(%arg0: i32) -> (i32, i32) {
    %c0_i32 = arith.constant 0 : i32
    %c0_i32_0 = arith.constant 0 : i32
    %c0_i32_1 = arith.constant 0 : i32
    return %c0_i32, %c0_i32_0 : i32, i32
  }
  func.func @transform_1(%arg0: i32) -> (i32, i32) {
    %c0_i32 = arith.constant 0 : i32
    %c0_i32_0 = arith.constant 0 : i32
    %c0_i32_1 = arith.constant 0 : i32
    return %c0_i32, %c0_i32_0 : i32, i32
  }
  func.func @transform_2(%arg0: i32) -> (i32, i32) {
    %c0_i32 = arith.constant 0 : i32
    %c0_i32_0 = arith.constant 0 : i32
    %c0_i32_1 = arith.constant 0 : i32
    return %c0_i32, %c0_i32_0 : i32, i32
  }
  func.func @transform_3(%arg0: i32) -> (i32, i32) {
    %c0_i32 = arith.constant 0 : i32
    %c0_i32_0 = arith.constant 0 : i32
    %c0_i32_1 = arith.constant 0 : i32
    return %c0_i32, %c0_i32_0 : i32, i32
  }
  func.func @transform_4(%arg0: i32) -> (i32, i32) {
    %c0_i32 = arith.constant 0 : i32
    %c0_i32_0 = arith.constant 0 : i32
    %c0_i32_1 = arith.constant 0 : i32
    return %c0_i32, %c0_i32_0 : i32, i32
  }
  func.func @transform_5(%arg0: i32) -> (i32, i32) {
    %c0_i32 = arith.constant 0 : i32
    %c0_i32_0 = arith.constant 0 : i32
    %c0_i32_1 = arith.constant 0 : i32
    return %c0_i32, %c0_i32_0 : i32, i32
  }
  func.func @transform_6(%arg0: i32) -> (i32, i32) {
    %c0_i32 = arith.constant 0 : i32
    %c0_i32_0 = arith.constant 0 : i32
    %c0_i32_1 = arith.constant 0 : i32
    return %c0_i32, %c0_i32_0 : i32, i32
  }
  func.func @transform_7(%arg0: i32) -> (i32, i32) {
    %c0_i32 = arith.constant 0 : i32
    %c0_i32_0 = arith.constant 0 : i32
    %c0_i32_1 = arith.constant 0 : i32
    return %c0_i32, %c0_i32_0 : i32, i32
  }
  func.func @transform_8(%arg0: i32) -> (i32, i32) {
    %c0_i32 = arith.constant 0 : i32
    %c0_i32_0 = arith.constant 0 : i32
    %c0_i32_1 = arith.constant 0 : i32
    return %c0_i32, %c0_i32_0 : i32, i32
  }
  func.func @transform_9(%arg0: i32) -> (i32, i32) {
    %c0_i32 = arith.constant 0 : i32
    %c0_i32_0 = arith.constant 0 : i32
    %c0_i32_1 = arith.constant 0 : i32
    return %c0_i32, %c0_i32_0 : i32, i32
  }
  func.func @transform_10(%arg0: i32) -> (i32, i32) {
    %c0_i32 = arith.constant 0 : i32
    %c0_i32_0 = arith.constant 0 : i32
    %c0_i32_1 = arith.constant 0 : i32
    return %c0_i32, %c0_i32_0 : i32, i32
  }
  func.func @transform_11(%arg0: i32) -> (i32, i32) {
    %c0_i32 = arith.constant 0 : i32
    %c0_i32_0 = arith.constant 0 : i32
    %c0_i32_1 = arith.constant 0 : i32
    return %c0_i32, %c0_i32_0 : i32, i32
  }
}

</mosaic_0001>

<bundles_post_ra>
// kernel: squeeze.5
= control target key start
LH: loop header
LB: loop body
LE: loop exit
PB: predicated region body
PF: predicated region fallthrough
CT: control target
= control target key end

     0   :  { %s85_s0 = inlined_call_operand.vmem [shape: f32[4], index: 0, kind: input, shape index: {}]   ;;  %s86_s1 = inlined_call_operand.hbm [shape: f32[2,2], index: 1, kind: output, shape index: {}]  }
   0x1   :  { %v5_v0 = vld [vmem:[%s85_s0] sm:$0x1] }
   0x2   :  { %2 = vsyncpa [#allocation1], 0  ;;  %6 = vst [vmem:[#allocation3] sm:$0x1] %v5_v0  ;;  %vm8_vm0 = vcmask 15360   ;;  %s58_s0 = smov 126  }
   0x3   :  { %s59_s8 = smov [#allocation0]  }
   0x4   :  { %s26_s9 = sshll.u32 %s59_s8, 4  ;;  %s27_s9 = int_to_ptr.vmem [resolvable:$true] %s26_s9 }
   0x5   :  { %s34_s10 = scalar_lea.vmem %s27_s9, 32  ;;  %p39_p1 = scmp.lt.s32.totalorder %s27_s9, %s27_s9 }
   0x6   :  { %p35_p0 = scmp.ne.s32.totalorder %s27_s9, %s34_s10  ;;  %p40_p2 = scmp.lt.s32.totalorder %s34_s10, %s34_s10 }
   0x8   :  { %p41_p3 = por %p40_p2, %p39_p1 }
   0x9   :  { %v10_v1 = vld [vmem:[#allocation3] sm:$0x1]  }
   0xa   :  { %v7_v2 = vld [vmem:[#allocation3] sm:$0x1]   ;;  %11 = vrot.lane.b32.xlu0 %v10_v1, %s58_s0  ;;  %p42_p4 = pnand %p41_p3, %p35_p0 }
   0xb   :  { %9 = vst.msk [vmem:[#allocation2] sm:$0x1] %vm8_vm0, %v7_v2  }
  0x7c   :  { %v12_v3 = vpop.permute.xlu0 %11  }
  0x7d   :  { %15 = vst.msk [vmem:[#allocation2 + $0x1] sm:$0x1] %vm8_vm0, %v12_v3  }
  0x84   :  { %v19_v4 = vld [vmem:[#allocation2] sm:$0x3] }
  0x85   :  { %21 = vst [vmem:[#allocation0] sm:$0x3] %v19_v4 }
  0x86   :  { %45 = shalt.err (!%p42_p4)
}
  0x87   :  { %s46_s13 = scalar_lea.hbm %s86_s1, 32 }
  0x88   :  { %p47_p5 = scmp.ne.s32.totalorder %s86_s1, %s46_s13  ;;  %p50_p6 = scmp.lt.u32.totalorder %s46_s13, %s86_s1 }
  0x8a   :  { %p52_p7 = pnand %p50_p6, %p47_p5 }
  0x8c   :  { %55 = shalt.err (!%p52_p7)
}
  0x8d   :  { %29 = dma.vmem_to_hbm [thread:$0]  %s27_s9, 32, %s86_s1, [#allocation1]  }
  0x8e   :  { %56 = dma.done.wait [#allocation1], 32  }
  0x8f   :  { %57 = vsyncadd [#allocation1], 4294967264 }
  0x90   :  { %31 = vsyncpa [#allocation1], 1 }

// kernel: net_forward.1
= control target key start
LH: loop header
LB: loop body
LE: loop exit
PB: predicated region body
PF: predicated region fallthrough
CT: control target
= control target key end

     0   :  { %v2054_v3 = vmov 0.0|0.0   ;;  %vm2055_vm0 = vmmov 0   ;;  %v2056_v6 = vmov 0.0   ;;  %s2332_s0 = inlined_call_operand.vmem [shape: f32[8,32], index: 0, kind: input, shape index: {}]   ;;  %s2333_s1 = inlined_call_operand.vmem [shape: f32[16,60], index: 1, kind: input, shape index: {}]   ;;  %s2334_s2 = inlined_call_operand.vmem [shape: bf16[16,8], index: 2, kind: input, shape index: {}]   ;;  %s2335_s3 = inlined_call_operand.vmem [shape: bf16[16,8], index: 3, kind: input, shape index: {}]   ;;  %s2336_s4 = inlined_call_operand.vmem [shape: f32[32,18], index: 4, kind: input, shape index: {}]   ;;  %s2337_s5 = inlined_call_operand.vmem [shape: f32[1,16], index: 5, kind: input, shape index: {}]   ;;  %s2338_s6 = inlined_call_operand.vmem [shape: f32[16,128], index: 6, kind: input, shape index: {}]   ;;  %s2339_s7 = inlined_call_operand.vmem [shape: f32[16,2], index: 7, kind: input, shape index: {}]   ;;  %s2340_s8 = inlined_call_operand.vmem [shape: f32[1,128], index: 8, kind: input, shape index: {}]   ;;  %s2341_s9 = inlined_call_operand.vmem [shape: f32[60,2], index: 9, kind: input, shape index: {}]   ;;  %s2342_s10 = inlined_call_operand.hbm [shape: f32[8,128], index: 10, kind: output, shape index: {0}]   ;;  %s2343_s11 = inlined_call_operand.vmem [shape: f32[4,1], index: 11, kind: output, shape index: {1}]  }
   0x1   :  { %v143_v0 = vld [vmem:[%s2336_s4] sm:$0xff]  ;;  %v144_v1 = vld [vmem:[%s2336_s4 + $0x8] sm:$0xff]  ;;  %v145_v2 = vld [vmem:[%s2336_s4 + $0x10] sm:$0xff]  ;;  %1970 = vmatprep.subr.bf16.mxu1 %v2054_v3  ;;  %1846 = vmatprep.mubr.msk.f32.mxu1 %vm2055_vm0, %v2056_v6 }
   0x2   :  { %v1971_v4 = vpack.c.bf16 %v144_v1, %v143_v0  ;;  %v146_v5 = vld [vmem:[%s2336_s4 + $0x18] sm:$0xff]  ;;  %v49_v7 = vld [vmem:[%s2341_s9] sm:$0xff]  ;;  %v50_v8 = vld [vmem:[%s2341_s9 + $0x8] sm:$0xff] }
   0x3   :  { %v51_v9 = vld [vmem:[%s2341_s9 + $0x10] sm:$0xff]  ;;  %v52_v10 = vld [vmem:[%s2341_s9 + $0x18] sm:$0xff]  ;;  %v1974_v11 = vpack.c.bf16 %v146_v5, %v145_v2  ;;  %v1952_v12 = vpack.c.bf16 %v50_v8, %v49_v7  ;;  %v53_v14 = vld [vmem:[%s2341_s9 + $0x20] sm:$0xff] }
   0x4   :  { %1972 = vmatpush3.bf16.msra.mxu1 %v1971_v4  ;;  %v1956_v13 = vpack.c.bf16 %v52_v10, %v51_v9  ;;  %v54_v15 = vld [vmem:[%s2341_s9 + $0x28] sm:$0xff] }
   0x5   :  { %1973 = vmatprep.subr.bf16.mxu1 %v2054_v3  ;;  %1953 = vmatprep.subr.bf16.mxu0 %v1952_v12 }
   0x6   :  { %17 = vsyncpa [#allocation3], 0  ;;  %1955 = vmatpush3.bf16.msra.mxu0 %v1952_v12  ;;  %v2161_v16 = vld [vmem:[%s2332_s0] sm:$0xff]  ;;  %vm147_vm1 = vcmask 261120   ;;  %v1960_v17 = vpack.c.bf16 %v54_v15, %v53_v14  ;;  %v55_v18 = vld [vmem:[%s2341_s9 + $0x30] sm:$0xff]  ;;  %vm64_vm2 = vcmask 1043456  }
   0x7   :  { %1957 = vmatprep.subr.bf16.mxu0 %v1956_v13  ;;  %v56_v19 = vld [vmem:[%s2341_s9 + $0x38] sm:$0xf]  ;;  %vm2057_vm3 = vmmov 1   ;;  %v47_v21 = vld [vmem:[%s2333_s1] sm:$0xff]  ;;  %vm57_vm5 = vcmask 490496   ;;  %v48_v22 = vld [vmem:[%s2333_s1 + $0x8] sm:$0xff] }
   0x8   :  { %1975 = vmatpush3.bf16.msra.mxu1 %v1974_v11  ;;  %v1964_v20 = vpack.c.bf16 %v56_v19, %v55_v18  ;;  %vm1965_vm4 = vmpackc.low %vm64_vm2, %vm2057_vm3  ;;  %1835 = vmatprep.mubr.msk.f32.mxu0 %vm57_vm5, %v47_v21  ;;  %v1747_v23 = vld [vmem:[%s2335_s3] sm:$0xff]   ;;  %vm226_vm6 = vcmask 64512   ;;  %s2058_s1 = smov 111   ;;  %v2060_v35 = vmov 0   ;;  %vm469_vm11 = vcmask 130048   ;;  %s2063_s18 = smov [#allocation2]  }
   0x9   :  { %v2180_v24 = vunpack.c.l.bf16 %v1747_v23  ;;  %v1743_v25 = vld [vmem:[%s2334_s2] sm:$0xff]   ;;  %s2059_s2 = smov 112   ;;  %v2202_v32 = vunpack.c.h.bf16 %v1747_v23  ;;  %2012 = vset.pattern.permute.xlu1 %v2060_v35  ;;  %s1696_s19 = sshll.u32 %s2063_s18, 4  ;;  %s1697_s19 = int_to_ptr.vmem [resolvable:$true] %s1696_s19 }
   0xa   :  { %1959 = vmatpush3.bf16.msra.mxu0 %v1956_v13  ;;  %v2187_v26 = vunpack.c.l.bf16 %v1743_v25  ;;  %v2191_v29 = vunpack.c.h.bf16 %v1743_v25  ;;  %s2030_s20 = scalar_lea.vmem %s1697_s19, 128  ;;  %p2035_p1 = scmp.lt.s32.totalorder %s1697_s19, %s1697_s19 }
   0xb   :  { %1847 = vmatmul.mubr.msk.f32.vlgmr.msra.gmra.mrb[0].mxu1 %vm147_vm1, %v2161_v16  ;;  %1961 = vmatprep.subr.bf16.mxu0 %v1960_v17  ;;  %vm400_vm9 = vcmp.gt.f32.partialorder %v2180_v24, 0.0  ;;  %vm401_vm10 = vcmp.gt.f32.partialorder %v2202_v32, 0.0  ;;  %p2031_p0 = scmp.ne.s32.totalorder %s1697_s19, %s2030_s20  ;;  %p2036_p2 = scmp.lt.s32.totalorder %s2030_s20, %s2030_s20 }
   0xc   :  { %1851 = vmatprep.mubr.msk.f32.mxu1 %vm226_vm6, %v2180_v24 }
   0xd   :  { %p2037_p3 = por %p2036_p2, %p2035_p1 }
   0xe   :  { %1963 = vmatpush3.bf16.msra.mxu0 %v1960_v17 }
   0xf   :  { %1966 = vmatprep.subr.msk.bf16.mxu0 %vm1965_vm4, %v1964_v20  ;;  %p2038_p4 = pnand %p2037_p3, %p2031_p0 }
  0x12   :  { %1969 = vmatpush3.bf16.msk.msra.mxu0 %vm1965_vm4, %v1964_v20 }
  0x15   :  { %1836 = vmatmul.mubr.msk.f32.vlgmr.msra.gmra.mrb[0].mxu0 %vm57_vm5, %v48_v22 }
  0x16   :  { %1873 = vmatprep.mubr.msk.f32.mxu0 %vm226_vm6, %v2187_v26 }
  0xde   :  { %v217_v27 = vpop.f32.mrb[0].mxu1 }
  0xdf   :  { %223 = vrot.lane.b32.xlu0 %v217_v27, %s2058_s1  ;;  %v1848_v28 = vpop.f32.mrb[1].mxu1  ;;  %1871 = vmatprep.subr.mxu0 %v217_v27 }
  0xe0   :  { %1872 = vmatpush3.msra.mxu0 %v217_v27 }
  0xe1   :  { %1874 = vmatmul.mubr.msk.f32.vlgmr.msra.gmra.mrb[2].mxu0 %vm226_vm6, %v2191_v29  ;;  %1982 = vmatprep.subr.bf16.mxu0 %v2054_v3 }
  0xe2   :  { %1887 = vmatprep.mubr.msk.f32.mxu0 %vm2055_vm0, %v2056_v6 }
  0xe3   :  { %308 = vrot.lane.b32.xlu0 %v217_v27, %s2059_s2 }
  0xe8   :  { %v2198_v30 = vpop.f32.mrb[0].mxu0 }
  0xe9   :  { %v2200_v31 = vpop.f32.mrb[1].mxu0 }
 0x151   :  { %v224_v33 = vpop.permute.xlu0 %223 }
 0x152   :  { %1849 = vmatprep.subr.mxu1 %v224_v33 }
 0x153   :  { %1850 = vmatpush3.msra.mxu1 %v224_v33  ;;  %v786_v33 = vld [vmem:[%s2338_s6] sm:$0xff] }
 0x154   :  { %1852 = vmatmul.mubr.msk.f32.vlgmr.msra.gmra.mrb[2].mxu1 %vm226_vm6, %v2202_v32 }
 0x155   :  { %v309_v34 = vpop.permute.xlu0 %308  ;;  %1856 = vmatprep.mubr.msk.f32.mxu1 %vm226_vm6, %v2187_v26 }
 0x156   :  { %1854 = vmatprep.subr.mxu1 %v309_v34 }
 0x157   :  { %1855 = vmatpush3.msra.mxu1 %v309_v34  ;;  %v787_v34 = vld [vmem:[%s2338_s6 + $0x8] sm:$0xff]  ;;  %s2061_s6 = smov 127  }
 0x158   :  { %1976 = vmatprep.subr.bf16.mxu1 %v2054_v3 }
 0x15c   :  { %1857 = vmatmul.mubr.msk.f32.vlgmr.msra.gmra.mrb[2].mxu1 %vm226_vm6, %v2191_v29 }
 0x15d   :  { %1863 = vmatprep.mubr.msk.f32.mxu1 %vm2055_vm0, %v2056_v6 }
 0x1b4   :  { %v1875_v11 = vpop.f32.mrb[2].mxu0 }
 0x1b5   :  { %v688_v12 = vpop.f32.mrb[3].mxu0 }
 0x22f   :  { %v1858_v36 = vpop.f32.mrb[2].mxu1 }
 0x230   :  { %v393_v37 = vadd.f32 %v1858_v36, %v2198_v30  ;;  %v383_v38 = vpop.f32.mrb[3].mxu1  ;;  %v1983_v36 = vpack.c.bf16 %v787_v34, %v786_v33 }
 0x231   :  { %v392_v39 = vadd.f32 %v383_v38, %v2200_v31 }
 0x232   :  { %v397_v41 = vmul.f32 0.2, %v393_v37  ;;  %vm395_vm8 = vcmp.ge.f32.partialorder %v393_v37, 0.0  ;;  %1984 = vmatpush3.bf16.msra.mxu0 %v1983_v36 }
 0x233   :  { %vm394_vm7 = vcmp.ge.f32.partialorder %v392_v39, 0.0  ;;  %v396_v40 = vmul.f32 0.2, %v392_v39 }
 0x234   :  { %v399_v43 = vsel %vm395_vm8, %v393_v37, %v397_v41  ;;  %v862_v37 = vld [vmem:[%s2339_s7 + $0x8] sm:$0xff] }
 0x235   :  { %v398_v42 = vsel %vm394_vm7, %v392_v39, %v396_v40  ;;  %v1721_v39 = vld [vmem:[%s2337_s5] ss:$0 sm:$0xff] }
 0x236   :  { %404 = vperm.xlu1 %2012, %v398_v42  }
 0x23a   :  { %409 = vperm.xlu1 %2012, %v399_v43  }
 0x2b5   :  { %v405_v44 = vpop.permute.xlu1 %404 }
 0x2b6   :  { %v412_v45 = vsel %vm400_vm9, %v405_v44, -1e+30 }
 0x2b7   :  { %v414_v48 = vsel %vm226_vm6, %v412_v45, -inf }
 0x2b9   :  { %v410_v46 = vpop.permute.xlu1 %409 }
 0x2ba   :  { %v413_v47 = vsel %vm401_vm10, %v410_v46, -1e+30 }
 0x2bb   :  { %v415_v49 = vsel %vm226_vm6, %v413_v47, -inf }
 0x2bc   :  { %v416_v50 = vmax.f32 %v414_v48, %v415_v49 }
 0x2be   :  { %v417_v51 = vrot.slane %v416_v50, 4 }
 0x2c0   :  { %v418_v52 = vmax.f32 %v416_v50, %v417_v51 }
 0x2c2   :  { %v419_v53 = vrot.slane %v418_v52, 2 }
 0x2c4   :  { %v420_v54 = vmax.f32 %v418_v52, %v419_v53 }
 0x2c6   :  { %v421_v55 = vrot.slane %v420_v54, 1 }
 0x2c8   :  { %v422_v56 = vmax.f32 %v420_v54, %v421_v55 }
 0x2ca   :  { %v424_v57 = vmul.f32 %v2202_v32, %v422_v56  ;;  %v423_v58 = vmul.f32 %v2180_v24, %v422_v56 }
 0x2cc   :  { %v428_v59 = vsel %vm226_vm6, %v424_v57, 0.0  ;;  %v425_v60 = vsel %vm226_vm6, %v423_v58, 0.0 }
 0x2cd   :  { %429 = vadd.xlane.f32.xlu1 %v428_v59  ;;  %426 = vadd.xlane.f32.xlu0 %v425_v60 }
 0x2fa   :  { %437 = vxpose.xlu0.b32.start [1/2] (short) (narrow) %v2180_v24, 8 }
 0x2fe   :  { %438 = vxpose.xlu0.b32.end [2/2] (short) (narrow) %v2202_v32, 8 }
 0x327   :  { %2013 = vset.pattern.permute.xlu0 %v2060_v35  ;;  %v861_v35 = vld [vmem:[%s2339_s7] sm:$0xff] }
 0x328   :  { %v1986_v38 = vpack.c.bf16 %v862_v37, %v861_v35 }
 0x35a   :  { %v430_v61 = vpop.xlane.xlu1 %429  ;;  %v427_v62 = vpop.xlane.xlu0 %426 }
 0x35b   :  { %v432_v63 = vsub.f32 %v399_v43, %v430_v61  ;;  %v431_v0 = vsub.f32 %v398_v42, %v427_v62 }
 0x35d   :  { %v435_v1 = vmul.f32 1.442695, %v432_v63  ;;  %v433_v2 = vmul.f32 1.442695, %v431_v0 }
 0x35f   :  { %2014 = vpow2.f32 %v435_v1 }
 0x360   :  { %2016 = vpow2.f32 %v433_v2 }
 0x369   :  { %v2015_v4 = vpop.eup %2014 }
 0x36a   :  { %v2017_v5 = vpop.eup %2016 }
 0x36b   :  { %v1977_v7 = vpack.c.bf16 %v2015_v4, %v2017_v5 }
 0x36d   :  { %1978 = vmatpush3.bf16.msra.mxu1 %v1977_v7 }
 0x37a   :  { %v2229_v8 = vpop.trf.xlu0 }
 0x37b   :  { %1864 = vmatmul.mubr.msk.f32.vlgmr.msra.gmra.mrb[4].mxu1 %vm469_vm11, %v2229_v8 }
 0x37c   :  { %1868 = vmatprep.mubr.msk.f32.mxu1 %vm226_vm6, %v2180_v24 }
 0x44e   :  { %v539_v9 = vpop.f32.mrb[4].mxu1 }
 0x44f   :  { %v1865_v10 = vpop.f32.mrb[5].mxu1  ;;  %1866 = vmatprep.subr.mxu1 %v539_v9 }
 0x450   :  { %1867 = vmatpush3.msra.mxu1 %v539_v9 }
 0x451   :  { %1869 = vmatmul.mubr.msk.f32.vlgmr.msra.gmra.mrb[6].mxu1 %vm226_vm6, %v2202_v32  ;;  %1979 = vmatprep.subr.bf16.mxu1 %v2054_v3 }
 0x452   :  { %1880 = vmatprep.mubr.msk.f32.mxu1 %vm2055_vm0, %v2056_v6 }
 0x524   :  { %v1870_v13 = vpop.f32.mrb[6].mxu1 }
 0x525   :  { %v609_v14 = vpop.f32.mrb[7].mxu1  ;;  %v615_v15 = vadd.f32 1e-16, %v1870_v13 }
 0x526   :  { %v610_v17 = vadd.f32 1e-16, %v609_v14 }
 0x528   :  { %2018 = vrcp.f32 %v610_v17 }
 0x529   :  { %2020 = vrcp.f32 %v615_v15 }
 0x532   :  { %v2019_v18 = vpop.eup %2018 }
 0x533   :  { %v619_v19 = vmul.f32 %v2019_v18, %v2017_v5  ;;  %v2021_v20 = vpop.eup %2020 }
 0x534   :  { %v621_v21 = vmul.f32 %v2021_v20, %v2015_v4 }
 0x535   :  { %699 = vperm.xlu1 %2012, %v619_v19  }
 0x539   :  { %704 = vperm.xlu1 %2012, %v621_v21  }
 0x5b4   :  { %v700_v22 = vpop.permute.xlu1 %699 }
 0x5b5   :  { %v707_v25 = vmul.f32 %v700_v22, %v688_v12 }
 0x5b8   :  { %v705_v23 = vpop.permute.xlu1 %704 }
 0x5b9   :  { %v708_v27 = vmul.f32 %v1875_v11, %v705_v23 }
 0x5bb   :  { %v1980_v28 = vpack.c.bf16 %v708_v27, %v707_v25 }
 0x5bd   :  { %1981 = vmatpush3.bf16.msra.mxu1 %v1980_v28 }
 0x5be   :  { %1985 = vmatprep.subr.bf16.mxu1 %v2054_v3 }
 0x5c0   :  { %1881 = vmatmul.mubr.msk.f32.vlgmr.msra.gmra.mrb[8].mxu1 %vm469_vm11, %v2229_v8 }
 0x5c1   :  { %1894 = vmatprep.mubr.msk.f32.mxu1 %vm2055_vm0, %v2056_v6  ;;  %1987 = vmatpush3.bf16.msra.mxu1 %v1986_v38 }
 0x5c2   :  { %1988 = vmatprep.subr.bf16.mxu1 %v2054_v3 }
 0x693   :  { %v781_v40 = vpop.f32.mrb[8].mxu1 }
 0x694   :  { %v782_v41 = vadd.f32 %v1721_v39, %v781_v40  ;;  %v1882_v42 = vpop.f32.mrb[9].mxu1 }
 0x696   :  { %v785_v43 = vmax.f32 %v782_v41, 0.0 }
 0x698   :  { %1888 = vmatmul.mubr.msk.f32.vlgmr.msra.gmra.mrb[4].mxu0 %vm469_vm11, %v785_v43  ;;  %1895 = vmatmul.mubr.msk.f32.vlgmr.msra.gmra.mrb[10].mxu1 %vm469_vm11, %v785_v43 }
 0x699   :  { %1899 = vmatprep.mubr.msk.f32.mxu0 %vm226_vm6, %v2180_v24  ;;  %1911 = vmatprep.mubr.msk.f32.mxu1 %vm2055_vm0, %v2056_v6 }
 0x76b   :  { %v857_v44 = vpop.f32.mrb[4].mxu0  ;;  %v929_v45 = vpop.f32.mrb[10].mxu1 }
 0x76c   :  { %v1889_v46 = vpop.f32.mrb[5].mxu0  ;;  %935 = vrot.lane.b32.xlu1 %v929_v45, %s2061_s6  ;;  %v1896_v47 = vpop.f32.mrb[11].mxu1 }
 0x770   :  { %1090 = vrot.lane.b32.xlu1 %v2200_v31, %s2061_s6 }
 0x774   :  { %1092 = vrot.lane.b32.xlu1 %v2198_v30, %s2061_s6 }
 0x7de   :  { %v936_v48 = vpop.permute.xlu1 %935 }
 0x7df   :  { %1897 = vmatprep.subr.mxu0 %v936_v48 }
 0x7e0   :  { %1898 = vmatpush3.msra.mxu0 %v936_v48 }
 0x7e1   :  { %1900 = vmatmul.mubr.msk.f32.vlgmr.msra.gmra.mrb[6].mxu0 %vm226_vm6, %v2202_v32  ;;  %1902 = vmatprep.subr.mxu0 %v929_v45 }
 0x7e2   :  { %1903 = vmatpush3.msra.mxu0 %v929_v45  ;;  %1904 = vmatprep.mubr.msk.f32.mxu0 %vm226_vm6, %v2187_v26  ;;  %v1091_v30 = vpop.permute.xlu1 %1090  ;;  %v1734_v45 = vld [vmem:[%s2340_s8] ss:$0 sm:$0xff] }
 0x7e3   :  { %1919 = vmatprep.subr.mxu0 %v857_v44 }
 0x7e6   :  { %v1093_v49 = vpop.permute.xlu1 %1092 }
 0x7e9   :  { %1905 = vmatmul.mubr.msk.f32.vlgmr.msra.gmra.mrb[6].mxu0 %vm226_vm6, %v2191_v29 }
 0x7ea   :  { %1920 = vmatpush3.msra.mxu0 %v857_v44  ;;  %1921 = vmatprep.mubr.msk.f32.mxu0 %vm226_vm6, %v2187_v26 }
 0x7eb   :  { %1931 = vmatprep.subr.mxu0 %v2161_v16 }
 0x7ed   :  { %1922 = vmatmul.mubr.msk.f32.vlgmr.msra.gmra.mrb[8].mxu0 %vm226_vm6, %v2191_v29 }
 0x7ee   :  { %1932 = vmatpush3.msra.mxu0 %v2161_v16  ;;  %1933 = vmatprep.mubr.msk.f32.mxu0 %vm226_vm6, %v2187_v26 }
 0x7f1   :  { %1934 = vmatmul.mubr.msk.f32.vlgmr.msra.gmra.mrb[10].mxu0 %vm226_vm6, %v2191_v29 }
 0x8bc   :  { %v1906_v31 = vpop.f32.mrb[6].mxu0 }
 0x8bd   :  { %v1079_v50 = vpop.f32.mrb[7].mxu0  ;;  %v1097_v51 = vadd.f32 %v1906_v31, %v1093_v49 }
 0x8be   :  { %v1096_v52 = vadd.f32 %v1091_v30, %v1079_v50 }
 0x8bf   :  { %v1101_v54 = vmul.f32 0.2, %v1097_v51  ;;  %vm1099_vm13 = vcmp.ge.f32.partialorder %v1097_v51, 0.0 }
 0x8c0   :  { %v1100_v53 = vmul.f32 0.2, %v1096_v52  ;;  %vm1098_vm12 = vcmp.ge.f32.partialorder %v1096_v52, 0.0  ;;  %v1923_v23 = vpop.f32.mrb[8].mxu0 }
 0x8c1   :  { %v1103_v56 = vsel %vm1099_vm13, %v1097_v51, %v1101_v54  ;;  %v1354_v38 = vpop.f32.mrb[9].mxu0 }
 0x8c2   :  { %v1102_v55 = vsel %vm1098_vm12, %v1096_v52, %v1100_v53 }
 0x8c3   :  { %1106 = vperm.xlu1 %2012, %v1102_v55  }
 0x8c4   :  { %v1935_v43 = vpop.f32.mrb[10].mxu0 }
 0x8c5   :  { %v1518_v44 = vpop.f32.mrb[11].mxu0 }
 0x8c7   :  { %1111 = vperm.xlu1 %2012, %v1103_v56  }
 0x942   :  { %v1107_v57 = vpop.permute.xlu1 %1106 }
 0x943   :  { %v1114_v26 = vsel %vm400_vm9, %v1107_v57, -1e+30 }
 0x944   :  { %v1116_v59 = vsel %vm226_vm6, %v1114_v26, -inf }
 0x946   :  { %v1112_v58 = vpop.permute.xlu1 %1111 }
 0x947   :  { %v1115_v29 = vsel %vm401_vm10, %v1112_v58, -1e+30 }
 0x948   :  { %v1117_v60 = vsel %vm226_vm6, %v1115_v29, -inf }
 0x949   :  { %v1118_v61 = vmax.f32 %v1116_v59, %v1117_v60 }
 0x94b   :  { %v1119_v62 = vrot.slane %v1118_v61, 4 }
 0x94d   :  { %v1120_v63 = vmax.f32 %v1118_v61, %v1119_v62 }
 0x94f   :  { %v1121_v0 = vrot.slane %v1120_v63, 2 }
 0x951   :  { %v1122_v1 = vmax.f32 %v1120_v63, %v1121_v0 }
 0x953   :  { %v1123_v2 = vrot.slane %v1122_v1, 1 }
 0x955   :  { %v1124_v4 = vmax.f32 %v1122_v1, %v1123_v2 }
 0x957   :  { %v1126_v5 = vmul.f32 %v2202_v32, %v1124_v4  ;;  %v1125_v7 = vmul.f32 %v2180_v24, %v1124_v4 }
 0x959   :  { %v1130_v9 = vsel %vm226_vm6, %v1126_v5, 0.0  ;;  %v1127_v10 = vsel %vm226_vm6, %v1125_v7, 0.0 }
 0x95a   :  { %1131 = vadd.xlane.f32.xlu0 %v1130_v9  ;;  %1128 = vadd.xlane.f32.xlu1 %v1127_v10 }
 0x9e7   :  { %v1132_v11 = vpop.xlane.xlu0 %1131  ;;  %v1129_v12 = vpop.xlane.xlu1 %1128 }
 0x9e8   :  { %v1134_v13 = vsub.f32 %v1103_v56, %v1132_v11  ;;  %v1133_v14 = vsub.f32 %v1102_v55, %v1129_v12 }
 0x9ea   :  { %v1137_v15 = vmul.f32 1.442695, %v1134_v13  ;;  %v1135_v17 = vmul.f32 1.442695, %v1133_v14 }
 0x9ec   :  { %2022 = vpow2.f32 %v1137_v15 }
 0x9ed   :  { %2024 = vpow2.f32 %v1135_v17 }
 0x9f6   :  { %v2023_v18 = vpop.eup %2022 }
 0x9f7   :  { %v2025_v19 = vpop.eup %2024 }
 0x9f8   :  { %v1989_v20 = vpack.c.bf16 %v2023_v18, %v2025_v19 }
 0x9fa   :  { %1990 = vmatpush3.bf16.msra.mxu1 %v1989_v20 }
 0x9fd   :  { %1912 = vmatmul.mubr.msk.f32.vlgmr.msra.gmra.mrb[12].mxu1 %vm469_vm11, %v2229_v8 }
 0x9fe   :  { %1916 = vmatprep.mubr.msk.f32.mxu1 %vm226_vm6, %v2180_v24 }
 0xad0   :  { %v1205_v21 = vpop.f32.mrb[12].mxu1 }
 0xad1   :  { %v1913_v22 = vpop.f32.mrb[13].mxu1  ;;  %1914 = vmatprep.subr.mxu1 %v1205_v21 }
 0xad2   :  { %1915 = vmatpush3.msra.mxu1 %v1205_v21 }
 0xad3   :  { %1917 = vmatmul.mubr.msk.f32.vlgmr.msra.gmra.mrb[14].mxu1 %vm226_vm6, %v2202_v32  ;;  %1991 = vmatprep.subr.bf16.mxu1 %v2054_v3 }
 0xad4   :  { %1928 = vmatprep.mubr.msk.f32.mxu1 %vm2055_vm0, %v2056_v6  ;;  %v2062_v6 = vmov 1.0|1.0  }
 0xad5   :  { %1994 = vmatprep.subr.bf16.mxu0 %v2062_v6 }
 0xad6   :  { %1995 = vmatpush3.bf16.msra.mxu0 %v2062_v6 }
 0xad7   :  { %1996 = vmatprep.subr.bf16.mxu0 %v2062_v6 }
 0xada   :  { %1997 = vmatpush3.bf16.msra.mxu0 %v2062_v6 }
 0xba6   :  { %v1918_v25 = vpop.f32.mrb[14].mxu1 }
 0xba7   :  { %v1281_v27 = vadd.f32 1e-16, %v1918_v25  ;;  %v1275_v28 = vpop.f32.mrb[15].mxu1 }
 0xba8   :  { %v1276_v33 = vadd.f32 1e-16, %v1275_v28 }
 0xba9   :  { %2026 = vrcp.f32 %v1281_v27 }
 0xbaa   :  { %2028 = vrcp.f32 %v1276_v33 }
 0xbb3   :  { %v2027_v34 = vpop.eup %2026 }
 0xbb4   :  { %v2029_v35 = vpop.eup %2028  ;;  %v1287_v36 = vmul.f32 %v2027_v34, %v2023_v18 }
 0xbb5   :  { %v1285_v37 = vmul.f32 %v2029_v35, %v2025_v19 }
 0xbb6   :  { %1370 = vperm.xlu0 %2013, %v1287_v36  }
 0xbb7   :  { %1365 = vperm.xlu1 %2012, %v1285_v37  }
 0xc35   :  { %v1371_v39 = vpop.permute.xlu0 %1370 }
 0xc36   :  { %v1374_v40 = vmul.f32 %v1923_v23, %v1371_v39  ;;  %v1366_v3 = vpop.permute.xlu1 %1365 }
 0xc37   :  { %v1373_v41 = vmul.f32 %v1366_v3, %v1354_v38 }
 0xc39   :  { %v1992_v42 = vpack.c.bf16 %v1374_v40, %v1373_v41 }
 0xc3b   :  { %1993 = vmatpush3.bf16.msra.mxu1 %v1992_v42 }
 0xc3c   :  { %1936 = vmatprep.subr.mxu1 %v2161_v16 }
 0xc3e   :  { %1929 = vmatmul.mubr.msk.f32.vlgmr.msra.gmra.mrb[16].mxu1 %vm469_vm11, %v2229_v8 }
 0xc3f   :  { %1937 = vmatpush3.msra.mxu1 %v2161_v16  ;;  %1938 = vmatprep.mubr.msk.f32.mxu1 %vm226_vm6, %v2180_v24 }
 0xc42   :  { %1939 = vmatmul.mubr.msk.f32.vlgmr.msra.gmra.mrb[18].mxu1 %vm226_vm6, %v2202_v32 }
 0xd11   :  { %v1447_v8 = vpop.f32.mrb[16].mxu1 }
 0xd12   :  { %v1448_v46 = vadd.f32 %v1734_v45, %v1447_v8  ;;  %v1930_v16 = vpop.f32.mrb[17].mxu1 }
 0xd14   :  { %1451 = vst [vmem:[#allocation2] sm:$0xff] %v1448_v46 }
 0xd15   :  { %v1940_v47 = vpop.f32.mrb[18].mxu1 }
 0xd16   :  { %v1603_v24 = vmul.f32 %v1940_v47, %v1935_v43  ;;  %v1593_v48 = vpop.f32.mrb[19].mxu1 }
 0xd17   :  { %v1602_v30 = vmul.f32 %v1593_v48, %v1518_v44 }
 0xd19   :  { %1949 = vmatprep.mubr.msk.f32.mxu0 %vm147_vm1, %v1602_v30 }
 0xd1a   :  { %1950 = vmatmul.mubr.msk.f32.vlgmr.msra.gmra.mrb[12].mxu0 %vm147_vm1, %v1603_v24 }
 0xd1b   :  { %2041 = shalt.err (!%p2038_p4)
}
 0xd1c   :  { %s2042_s22 = scalar_lea.hbm %s2342_s10, 128 }
 0xd1d   :  { %p2043_p5 = scmp.ne.s32.totalorder %s2342_s10, %s2042_s22  ;;  %p2046_p6 = scmp.lt.u32.totalorder %s2042_s22, %s2342_s10 }
 0xd1f   :  { %p2048_p7 = pnand %p2046_p6, %p2043_p5 }
 0xd21   :  { %2051 = shalt.err (!%p2048_p7)
}
 0xd22   :  { %1699 = dma.vmem_to_hbm [thread:$0]  %s1697_s19, 128, %s2342_s10, [#allocation3]   ;;  %vm1688_vm14 = vcmask 3072  }
 0xded   :  { %v1951_v32 = vpop.f32.mrb[12].mxu0 }
 0xdee   :  { %v1676_v31 = vpop.f32.mrb[13].mxu0 }
 0xdef   :  { %v1685_v49 = vrot.slane %v1676_v31, 4 }
 0xdf1   :  { %v1687_v50 = vadd.f32 %v1685_v49, %v1676_v31 }
 0xdf3   :  { %1689 = vst.msk [vmem:[%s2343_s11] sm:$0xf] %vm1688_vm14, %v1687_v50 }
 0xdf4   :  { %2052 = dma.done.wait [#allocation3], 128  }
 0xdf5   :  { %2053 = vsyncadd [#allocation3], 4294967168 }
 0xdf6   :  { %1707 = vsyncpa [#allocation3], 1 }

</bundles_post_ra>
